<compile_context>
chip_gen: v7x
topology: tpu7x:2x2x1
jax: 0.10.0
libtpu: 0.0.40
codegen_flags: <defaults>
</compile_context>

<pallas_src>
import jax
import jax.numpy as jnp
from jax.experimental import pallas as pl
from jax.experimental.pallas import tpu as pltpu


# Static channel configuration of the module.
C_IN, C_HID, C_OUT = 2, 5, 5
LANES = 128

# Offsets into the flattened parameter vector (row-major (Cin, Cout) weights).
_W1_OFF = 0
_B1_OFF = _W1_OFF + C_IN * C_HID        # 10
_W2_OFF = _B1_OFF + C_HID               # 15
_B2_OFF = _W2_OFF + C_HID * C_HID       # 40
_W3_OFF = _B2_OFF + C_HID               # 45
_B3_OFF = _W3_OFF + C_HID * C_OUT       # 70
_N_PARAMS = _B3_OFF + C_OUT             # 75


def _mlp_tanh_kernel(p_ref, x_ref, o_ref):
    """p_ref: (75,) f32 in SMEM (scalar prefetch).
    x_ref: (NB, C_IN, ROWS, 128) f32; o_ref: (NB, C_OUT, ROWS, 128) f32.

    Each channel is a dense (ROWS, 128) slab -> full (8,128) vreg tiles.
    Weights/biases are read as SMEM scalars; MACs run on the VPU, tanh on EUP.
    """
    nb = x_ref.shape[0]

    def layer(ins, w_off, b_off, cin, cout, act):
        outs = []
        for c in range(cout):
            y = ins[0] * p_ref[w_off + c]                       # w[0, c]
            for k in range(1, cin):
                y = y + ins[k] * p_ref[w_off + k * cout + c]    # w[k, c]
            outs.append(act(y + p_ref[b_off + c]))
        return outs

    relu = lambda v: jnp.maximum(v, 0.0)

    for b in range(nb):
        h = [x_ref[b, k] for k in range(C_IN)]                  # C_IN x (ROWS,128)

        h = layer(h, _W1_OFF, _B1_OFF, C_IN, C_HID, relu)       # conv1 + relu1
        h = layer(h, _W2_OFF, _B2_OFF, C_HID, C_HID, relu)      # conv2 + relu2

        # conv3 + relu3 + tanh: compute and store each channel directly,
        # no concatenate, minimal live ranges.
        for c in range(C_OUT):
            y = h[0] * p_ref[_W3_OFF + c]
            for k in range(1, C_HID):
                y = y + h[k] * p_ref[_W3_OFF + k * C_OUT + c]
            y = jnp.tanh(jnp.maximum(y + p_ref[_B3_OFF + c], 0.0))
            o_ref[b, c] = y.astype(o_ref.dtype)


def pack_params(params):
    """Flatten (w1,b1,w2,b2,w3,b3) into one f32 vector. Call once, reuse.

    Weights must be (Cin, Cout) matmul matrices.  NOTE: real PyTorch Conv2d
    weights are (Cout, Cin, 1, 1); squeeze and transpose before packing."""
    w1, b1, w2, b2, w3, b3 = params
    assert w1.shape == (C_IN, C_HID) and w2.shape == (C_HID, C_HID)
    assert w3.shape == (C_HID, C_OUT)
    flat = jnp.concatenate([
        w1.reshape(-1), b1.reshape(-1),
        w2.reshape(-1), b2.reshape(-1),
        w3.reshape(-1), b3.reshape(-1),
    ]).astype(jnp.float32)
    assert flat.shape[0] == _N_PARAMS
    return flat


def _pick_batch_block(n, rows):
    """Samples per grid step: whole (small) batch if double-buffered in+out
    stays well under the scoped-VMEM default."""
    per_sample = (C_IN + C_OUT) * rows * LANES * 4 * 2   # in+out, double-buffered
    budget = 8 * 1024 * 1024
    nb = max(1, min(n, budget // max(per_sample, 1)))
    while n % nb != 0:
        nb -= 1
    return nb


def model_tanh1_forward(t1, t2, params_flat):
    """t1: (N, C_IN, H, W) float32 NCHW. t2 is unused (matches the module)."""
    del t2  # unused in the reference module's forward
    N, Cin, H, W = t1.shape
    assert Cin == C_IN
    HW = H * W
    assert HW % LANES == 0, "H*W must be a multiple of 128"
    ROWS = HW // LANES
    NB = _pick_batch_block(N, ROWS)

    # NCHW -> (N, C, ROWS, 128): pure reshape, no transpose.
    # Each channel becomes full (8,128)-style vreg tiles.
    x = t1.reshape(N, Cin, ROWS, LANES)

    out = pl.pallas_call(
        _mlp_tanh_kernel,
        out_shape=jax.ShapeDtypeStruct((N, C_OUT, ROWS, LANES), jnp.float32),
        grid_spec=pltpu.PrefetchScalarGridSpec(
            num_scalar_prefetch=1,                 # params -> SMEM, once
            grid=(N // NB,),
            in_specs=[
                pl.BlockSpec((NB, C_IN, ROWS, LANES),
                             lambda g, p: (g, 0, 0, 0)),
            ],
            out_specs=pl.BlockSpec((NB, C_OUT, ROWS, LANES),
                                   lambda g, p: (g, 0, 0, 0)),
        ),
        compiler_params=pltpu.CompilerParams(
            dimension_semantics=("parallel",)),
    )(params_flat, x)

    # (N, C_OUT, ROWS, 128) -> NCHW, again a pure reshape.
    return out.reshape(N, C_OUT, H, W)


def init_params(key):
    """Deterministic params matching Conv2d(2,5,1), Conv2d(5,5,1) x2.

    Weights stored as (Cin, Cout) matmul matrices (equivalent to PyTorch's
    (Cout, Cin, 1, 1) conv weights, squeezed and transposed); biases (Cout,)."""
    k1, k2, k3, k4, k5, k6 = jax.random.split(key, 6)

    def uinit(k, shape, fan_in):
        bound = 1.0 / jnp.sqrt(fan_in)
        return jax.random.uniform(k, shape, jnp.float32, -bound, bound)

    w1 = uinit(k1, (C_IN, C_HID), C_IN)
    b1 = uinit(k2, (C_HID,), C_IN)
    w2 = uinit(k3, (C_HID, C_HID), C_HID)
    b2 = uinit(k4, (C_HID,), C_HID)
    w3 = uinit(k5, (C_HID, C_OUT), C_HID)
    b3 = uinit(k6, (C_OUT,), C_HID)
    return (w1, b1, w2, b2, w3, b3)


def _reference_forward(t1, params):
    """Plain-JAX reference for sanity checking."""
    w1, b1, w2, b2, w3, b3 = params
    x = jnp.transpose(t1, (0, 2, 3, 1))           # NHWC
    y = jnp.maximum(x @ w1 + b1, 0.0)
    y = jnp.maximum(y @ w2 + b2, 0.0)
    y = jnp.maximum(y @ w3 + b3, 0.0)
    y = jnp.tanh(y)
    return jnp.transpose(y, (0, 3, 1, 2))         # NCHW


if __name__ == "__main__":
    key = jax.random.PRNGKey(0)
    kp, kx, kt2 = jax.random.split(key, 3)

    params = init_params(kp)
    params_flat = pack_params(params)             # built once, reused per call

    # Matches the module's example input: torch.randn(1, 2, 32, 32)
    t1 = jax.random.normal(kx, (1, 2, 32, 32), jnp.float32)
    t2 = jax.random.normal(kt2, (1, 2, 32, 32), jnp.float32)  # unused

    out = model_tanh1_forward(t1, t2, params_flat)
    out = jax.block_until_ready(out)

    ref = _reference_forward(t1, params)
    assert out.shape == (1, 5, 32, 32)
    assert jnp.allclose(out, ref, atol=1e-5, rtol=1e-5)

    print("KERNEL_OK")
</pallas_src>

<mosaic_0001>
module attributes {stable_mosaic.version = 11 : i64} {
  func.func @_mlp_tanh_kernel(%arg0: i32, %arg1: memref<75xf32, #tpu.memory_space<smem>>, %arg2: memref<1x2x8x128xf32, #tpu.memory_space<vmem>>, %arg3: memref<1x5x8x128xf32, #tpu.memory_space<vmem>>) attributes {dimension_semantics = [#tpu.dimension_semantics<parallel>], iteration_bounds = array<i64: 1>, scalar_prefetch = 1 : i64, scratch_operands = 0 : i64, tpu.core_type = #tpu.core_type<tc>, window_params = [{transform_indices = @transform_0, window_bounds = array<i64: 1, 2, 8, 128>}, {transform_indices = @transform_1, window_bounds = array<i64: 1, 5, 8, 128>}]} {
    %c0 = arith.constant 0 : index
    %c0_0 = arith.constant 0 : index
    %c0_1 = arith.constant 0 : index
    %c0_2 = arith.constant 0 : index
    %0 = vector.load %arg2[%c0, %c0_0, %c0_1, %c0_2] : memref<1x2x8x128xf32, #tpu.memory_space<vmem>>, vector<1x1x8x128xf32>
    %1 = vector.shape_cast %0 : vector<1x1x8x128xf32> to vector<8x128xf32>
    %c0_3 = arith.constant 0 : index
    %c1 = arith.constant 1 : index
    %c0_4 = arith.constant 0 : index
    %c0_5 = arith.constant 0 : index
    %2 = vector.load %arg2[%c0_3, %c1, %c0_4, %c0_5] : memref<1x2x8x128xf32, #tpu.memory_space<vmem>>, vector<1x1x8x128xf32>
    %3 = vector.shape_cast %2 : vector<1x1x8x128xf32> to vector<8x128xf32>
    %c0_6 = arith.constant 0 : index
    %4 = memref.load %arg1[%c0_6] : memref<75xf32, #tpu.memory_space<smem>>
    %5 = vector.broadcast %4 : f32 to vector<8x128xf32>
    %6 = arith.mulf %1, %5 : vector<8x128xf32>
    %c5 = arith.constant 5 : index
    %7 = memref.load %arg1[%c5] : memref<75xf32, #tpu.memory_space<smem>>
    %8 = vector.broadcast %7 : f32 to vector<8x128xf32>
    %9 = arith.mulf %3, %8 : vector<8x128xf32>
    %10 = arith.addf %6, %9 : vector<8x128xf32>
    %c10 = arith.constant 10 : index
    %11 = memref.load %arg1[%c10] : memref<75xf32, #tpu.memory_space<smem>>
    %12 = vector.broadcast %11 : f32 to vector<8x128xf32>
    %13 = arith.addf %10, %12 : vector<8x128xf32>
    %cst = arith.constant 0.000000e+00 : f32
    %14 = vector.broadcast %cst : f32 to vector<8x128xf32>
    %15 = arith.maximumf %13, %14 : vector<8x128xf32>
    %c1_7 = arith.constant 1 : index
    %16 = memref.load %arg1[%c1_7] : memref<75xf32, #tpu.memory_space<smem>>
    %17 = vector.broadcast %16 : f32 to vector<8x128xf32>
    %18 = arith.mulf %1, %17 : vector<8x128xf32>
    %c6 = arith.constant 6 : index
    %19 = memref.load %arg1[%c6] : memref<75xf32, #tpu.memory_space<smem>>
    %20 = vector.broadcast %19 : f32 to vector<8x128xf32>
    %21 = arith.mulf %3, %20 : vector<8x128xf32>
    %22 = arith.addf %18, %21 : vector<8x128xf32>
    %c11 = arith.constant 11 : index
    %23 = memref.load %arg1[%c11] : memref<75xf32, #tpu.memory_space<smem>>
    %24 = vector.broadcast %23 : f32 to vector<8x128xf32>
    %25 = arith.addf %22, %24 : vector<8x128xf32>
    %cst_8 = arith.constant 0.000000e+00 : f32
    %26 = vector.broadcast %cst_8 : f32 to vector<8x128xf32>
    %27 = arith.maximumf %25, %26 : vector<8x128xf32>
    %c2 = arith.constant 2 : index
    %28 = memref.load %arg1[%c2] : memref<75xf32, #tpu.memory_space<smem>>
    %29 = vector.broadcast %28 : f32 to vector<8x128xf32>
    %30 = arith.mulf %1, %29 : vector<8x128xf32>
    %c7 = arith.constant 7 : index
    %31 = memref.load %arg1[%c7] : memref<75xf32, #tpu.memory_space<smem>>
    %32 = vector.broadcast %31 : f32 to vector<8x128xf32>
    %33 = arith.mulf %3, %32 : vector<8x128xf32>
    %34 = arith.addf %30, %33 : vector<8x128xf32>
    %c12 = arith.constant 12 : index
    %35 = memref.load %arg1[%c12] : memref<75xf32, #tpu.memory_space<smem>>
    %36 = vector.broadcast %35 : f32 to vector<8x128xf32>
    %37 = arith.addf %34, %36 : vector<8x128xf32>
    %cst_9 = arith.constant 0.000000e+00 : f32
    %38 = vector.broadcast %cst_9 : f32 to vector<8x128xf32>
    %39 = arith.maximumf %37, %38 : vector<8x128xf32>
    %c3 = arith.constant 3 : index
    %40 = memref.load %arg1[%c3] : memref<75xf32, #tpu.memory_space<smem>>
    %41 = vector.broadcast %40 : f32 to vector<8x128xf32>
    %42 = arith.mulf %1, %41 : vector<8x128xf32>
    %c8 = arith.constant 8 : index
    %43 = memref.load %arg1[%c8] : memref<75xf32, #tpu.memory_space<smem>>
    %44 = vector.broadcast %43 : f32 to vector<8x128xf32>
    %45 = arith.mulf %3, %44 : vector<8x128xf32>
    %46 = arith.addf %42, %45 : vector<8x128xf32>
    %c13 = arith.constant 13 : index
    %47 = memref.load %arg1[%c13] : memref<75xf32, #tpu.memory_space<smem>>
    %48 = vector.broadcast %47 : f32 to vector<8x128xf32>
    %49 = arith.addf %46, %48 : vector<8x128xf32>
    %cst_10 = arith.constant 0.000000e+00 : f32
    %50 = vector.broadcast %cst_10 : f32 to vector<8x128xf32>
    %51 = arith.maximumf %49, %50 : vector<8x128xf32>
    %c4 = arith.constant 4 : index
    %52 = memref.load %arg1[%c4] : memref<75xf32, #tpu.memory_space<smem>>
    %53 = vector.broadcast %52 : f32 to vector<8x128xf32>
    %54 = arith.mulf %1, %53 : vector<8x128xf32>
    %c9 = arith.constant 9 : index
    %55 = memref.load %arg1[%c9] : memref<75xf32, #tpu.memory_space<smem>>
    %56 = vector.broadcast %55 : f32 to vector<8x128xf32>
    %57 = arith.mulf %3, %56 : vector<8x128xf32>
    %58 = arith.addf %54, %57 : vector<8x128xf32>
    %c14 = arith.constant 14 : index
    %59 = memref.load %arg1[%c14] : memref<75xf32, #tpu.memory_space<smem>>
    %60 = vector.broadcast %59 : f32 to vector<8x128xf32>
    %61 = arith.addf %58, %60 : vector<8x128xf32>
    %cst_11 = arith.constant 0.000000e+00 : f32
    %62 = vector.broadcast %cst_11 : f32 to vector<8x128xf32>
    %63 = arith.maximumf %61, %62 : vector<8x128xf32>
    %c15 = arith.constant 15 : index
    %64 = memref.load %arg1[%c15] : memref<75xf32, #tpu.memory_space<smem>>
    %65 = vector.broadcast %64 : f32 to vector<8x128xf32>
    %66 = arith.mulf %15, %65 : vector<8x128xf32>
    %c20 = arith.constant 20 : index
    %67 = memref.load %arg1[%c20] : memref<75xf32, #tpu.memory_space<smem>>
    %68 = vector.broadcast %67 : f32 to vector<8x128xf32>
    %69 = arith.mulf %27, %68 : vector<8x128xf32>
    %70 = arith.addf %66, %69 : vector<8x128xf32>
    %c25 = arith.constant 25 : index
    %71 = memref.load %arg1[%c25] : memref<75xf32, #tpu.memory_space<smem>>
    %72 = vector.broadcast %71 : f32 to vector<8x128xf32>
    %73 = arith.mulf %39, %72 : vector<8x128xf32>
    %74 = arith.addf %70, %73 : vector<8x128xf32>
    %c30 = arith.constant 30 : index
    %75 = memref.load %arg1[%c30] : memref<75xf32, #tpu.memory_space<smem>>
    %76 = vector.broadcast %75 : f32 to vector<8x128xf32>
    %77 = arith.mulf %51, %76 : vector<8x128xf32>
    %78 = arith.addf %74, %77 : vector<8x128xf32>
    %c35 = arith.constant 35 : index
    %79 = memref.load %arg1[%c35] : memref<75xf32, #tpu.memory_space<smem>>
    %80 = vector.broadcast %79 : f32 to vector<8x128xf32>
    %81 = arith.mulf %63, %80 : vector<8x128xf32>
    %82 = arith.addf %78, %81 : vector<8x128xf32>
    %c40 = arith.constant 40 : index
    %83 = memref.load %arg1[%c40] : memref<75xf32, #tpu.memory_space<smem>>
    %84 = vector.broadcast %83 : f32 to vector<8x128xf32>
    %85 = arith.addf %82, %84 : vector<8x128xf32>
    %cst_12 = arith.constant 0.000000e+00 : f32
    %86 = vector.broadcast %cst_12 : f32 to vector<8x128xf32>
    %87 = arith.maximumf %85, %86 : vector<8x128xf32>
    %c16 = arith.constant 16 : index
    %88 = memref.load %arg1[%c16] : memref<75xf32, #tpu.memory_space<smem>>
    %89 = vector.broadcast %88 : f32 to vector<8x128xf32>
    %90 = arith.mulf %15, %89 : vector<8x128xf32>
    %c21 = arith.constant 21 : index
    %91 = memref.load %arg1[%c21] : memref<75xf32, #tpu.memory_space<smem>>
    %92 = vector.broadcast %91 : f32 to vector<8x128xf32>
    %93 = arith.mulf %27, %92 : vector<8x128xf32>
    %94 = arith.addf %90, %93 : vector<8x128xf32>
    %c26 = arith.constant 26 : index
    %95 = memref.load %arg1[%c26] : memref<75xf32, #tpu.memory_space<smem>>
    %96 = vector.broadcast %95 : f32 to vector<8x128xf32>
    %97 = arith.mulf %39, %96 : vector<8x128xf32>
    %98 = arith.addf %94, %97 : vector<8x128xf32>
    %c31 = arith.constant 31 : index
    %99 = memref.load %arg1[%c31] : memref<75xf32, #tpu.memory_space<smem>>
    %100 = vector.broadcast %99 : f32 to vector<8x128xf32>
    %101 = arith.mulf %51, %100 : vector<8x128xf32>
    %102 = arith.addf %98, %101 : vector<8x128xf32>
    %c36 = arith.constant 36 : index
    %103 = memref.load %arg1[%c36] : memref<75xf32, #tpu.memory_space<smem>>
    %104 = vector.broadcast %103 : f32 to vector<8x128xf32>
    %105 = arith.mulf %63, %104 : vector<8x128xf32>
    %106 = arith.addf %102, %105 : vector<8x128xf32>
    %c41 = arith.constant 41 : index
    %107 = memref.load %arg1[%c41] : memref<75xf32, #tpu.memory_space<smem>>
    %108 = vector.broadcast %107 : f32 to vector<8x128xf32>
    %109 = arith.addf %106, %108 : vector<8x128xf32>
    %cst_13 = arith.constant 0.000000e+00 : f32
    %110 = vector.broadcast %cst_13 : f32 to vector<8x128xf32>
    %111 = arith.maximumf %109, %110 : vector<8x128xf32>
    %c17 = arith.constant 17 : index
    %112 = memref.load %arg1[%c17] : memref<75xf32, #tpu.memory_space<smem>>
    %113 = vector.broadcast %112 : f32 to vector<8x128xf32>
    %114 = arith.mulf %15, %113 : vector<8x128xf32>
    %c22 = arith.constant 22 : index
    %115 = memref.load %arg1[%c22] : memref<75xf32, #tpu.memory_space<smem>>
    %116 = vector.broadcast %115 : f32 to vector<8x128xf32>
    %117 = arith.mulf %27, %116 : vector<8x128xf32>
    %118 = arith.addf %114, %117 : vector<8x128xf32>
    %c27 = arith.constant 27 : index
    %119 = memref.load %arg1[%c27] : memref<75xf32, #tpu.memory_space<smem>>
    %120 = vector.broadcast %119 : f32 to vector<8x128xf32>
    %121 = arith.mulf %39, %120 : vector<8x128xf32>
    %122 = arith.addf %118, %121 : vector<8x128xf32>
    %c32 = arith.constant 32 : index
    %123 = memref.load %arg1[%c32] : memref<75xf32, #tpu.memory_space<smem>>
    %124 = vector.broadcast %123 : f32 to vector<8x128xf32>
    %125 = arith.mulf %51, %124 : vector<8x128xf32>
    %126 = arith.addf %122, %125 : vector<8x128xf32>
    %c37 = arith.constant 37 : index
    %127 = memref.load %arg1[%c37] : memref<75xf32, #tpu.memory_space<smem>>
    %128 = vector.broadcast %127 : f32 to vector<8x128xf32>
    %129 = arith.mulf %63, %128 : vector<8x128xf32>
    %130 = arith.addf %126, %129 : vector<8x128xf32>
    %c42 = arith.constant 42 : index
    %131 = memref.load %arg1[%c42] : memref<75xf32, #tpu.memory_space<smem>>
    %132 = vector.broadcast %131 : f32 to vector<8x128xf32>
    %133 = arith.addf %130, %132 : vector<8x128xf32>
    %cst_14 = arith.constant 0.000000e+00 : f32
    %134 = vector.broadcast %cst_14 : f32 to vector<8x128xf32>
    %135 = arith.maximumf %133, %134 : vector<8x128xf32>
    %c18 = arith.constant 18 : index
    %136 = memref.load %arg1[%c18] : memref<75xf32, #tpu.memory_space<smem>>
    %137 = vector.broadcast %136 : f32 to vector<8x128xf32>
    %138 = arith.mulf %15, %137 : vector<8x128xf32>
    %c23 = arith.constant 23 : index
    %139 = memref.load %arg1[%c23] : memref<75xf32, #tpu.memory_space<smem>>
    %140 = vector.broadcast %139 : f32 to vector<8x128xf32>
    %141 = arith.mulf %27, %140 : vector<8x128xf32>
    %142 = arith.addf %138, %141 : vector<8x128xf32>
    %c28 = arith.constant 28 : index
    %143 = memref.load %arg1[%c28] : memref<75xf32, #tpu.memory_space<smem>>
    %144 = vector.broadcast %143 : f32 to vector<8x128xf32>
    %145 = arith.mulf %39, %144 : vector<8x128xf32>
    %146 = arith.addf %142, %145 : vector<8x128xf32>
    %c33 = arith.constant 33 : index
    %147 = memref.load %arg1[%c33] : memref<75xf32, #tpu.memory_space<smem>>
    %148 = vector.broadcast %147 : f32 to vector<8x128xf32>
    %149 = arith.mulf %51, %148 : vector<8x128xf32>
    %150 = arith.addf %146, %149 : vector<8x128xf32>
    %c38 = arith.constant 38 : index
    %151 = memref.load %arg1[%c38] : memref<75xf32, #tpu.memory_space<smem>>
    %152 = vector.broadcast %151 : f32 to vector<8x128xf32>
    %153 = arith.mulf %63, %152 : vector<8x128xf32>
    %154 = arith.addf %150, %153 : vector<8x128xf32>
    %c43 = arith.constant 43 : index
    %155 = memref.load %arg1[%c43] : memref<75xf32, #tpu.memory_space<smem>>
    %156 = vector.broadcast %155 : f32 to vector<8x128xf32>
    %157 = arith.addf %154, %156 : vector<8x128xf32>
    %cst_15 = arith.constant 0.000000e+00 : f32
    %158 = vector.broadcast %cst_15 : f32 to vector<8x128xf32>
    %159 = arith.maximumf %157, %158 : vector<8x128xf32>
    %c19 = arith.constant 19 : index
    %160 = memref.load %arg1[%c19] : memref<75xf32, #tpu.memory_space<smem>>
    %161 = vector.broadcast %160 : f32 to vector<8x128xf32>
    %162 = arith.mulf %15, %161 : vector<8x128xf32>
    %c24 = arith.constant 24 : index
    %163 = memref.load %arg1[%c24] : memref<75xf32, #tpu.memory_space<smem>>
    %164 = vector.broadcast %163 : f32 to vector<8x128xf32>
    %165 = arith.mulf %27, %164 : vector<8x128xf32>
    %166 = arith.addf %162, %165 : vector<8x128xf32>
    %c29 = arith.constant 29 : index
    %167 = memref.load %arg1[%c29] : memref<75xf32, #tpu.memory_space<smem>>
    %168 = vector.broadcast %167 : f32 to vector<8x128xf32>
    %169 = arith.mulf %39, %168 : vector<8x128xf32>
    %170 = arith.addf %166, %169 : vector<8x128xf32>
    %c34 = arith.constant 34 : index
    %171 = memref.load %arg1[%c34] : memref<75xf32, #tpu.memory_space<smem>>
    %172 = vector.broadcast %171 : f32 to vector<8x128xf32>
    %173 = arith.mulf %51, %172 : vector<8x128xf32>
    %174 = arith.addf %170, %173 : vector<8x128xf32>
    %c39 = arith.constant 39 : index
    %175 = memref.load %arg1[%c39] : memref<75xf32, #tpu.memory_space<smem>>
    %176 = vector.broadcast %175 : f32 to vector<8x128xf32>
    %177 = arith.mulf %63, %176 : vector<8x128xf32>
    %178 = arith.addf %174, %177 : vector<8x128xf32>
    %c44 = arith.constant 44 : index
    %179 = memref.load %arg1[%c44] : memref<75xf32, #tpu.memory_space<smem>>
    %180 = vector.broadcast %179 : f32 to vector<8x128xf32>
    %181 = arith.addf %178, %180 : vector<8x128xf32>
    %cst_16 = arith.constant 0.000000e+00 : f32
    %182 = vector.broadcast %cst_16 : f32 to vector<8x128xf32>
    %183 = arith.maximumf %181, %182 : vector<8x128xf32>
    %c45 = arith.constant 45 : index
    %184 = memref.load %arg1[%c45] : memref<75xf32, #tpu.memory_space<smem>>
    %185 = vector.broadcast %184 : f32 to vector<8x128xf32>
    %186 = arith.mulf %87, %185 : vector<8x128xf32>
    %c50 = arith.constant 50 : index
    %187 = memref.load %arg1[%c50] : memref<75xf32, #tpu.memory_space<smem>>
    %188 = vector.broadcast %187 : f32 to vector<8x128xf32>
    %189 = arith.mulf %111, %188 : vector<8x128xf32>
    %190 = arith.addf %186, %189 : vector<8x128xf32>
    %c55 = arith.constant 55 : index
    %191 = memref.load %arg1[%c55] : memref<75xf32, #tpu.memory_space<smem>>
    %192 = vector.broadcast %191 : f32 to vector<8x128xf32>
    %193 = arith.mulf %135, %192 : vector<8x128xf32>
    %194 = arith.addf %190, %193 : vector<8x128xf32>
    %c60 = arith.constant 60 : index
    %195 = memref.load %arg1[%c60] : memref<75xf32, #tpu.memory_space<smem>>
    %196 = vector.broadcast %195 : f32 to vector<8x128xf32>
    %197 = arith.mulf %159, %196 : vector<8x128xf32>
    %198 = arith.addf %194, %197 : vector<8x128xf32>
    %c65 = arith.constant 65 : index
    %199 = memref.load %arg1[%c65] : memref<75xf32, #tpu.memory_space<smem>>
    %200 = vector.broadcast %199 : f32 to vector<8x128xf32>
    %201 = arith.mulf %183, %200 : vector<8x128xf32>
    %202 = arith.addf %198, %201 : vector<8x128xf32>
    %c70 = arith.constant 70 : index
    %203 = memref.load %arg1[%c70] : memref<75xf32, #tpu.memory_space<smem>>
    %204 = vector.broadcast %203 : f32 to vector<8x128xf32>
    %205 = arith.addf %202, %204 : vector<8x128xf32>
    %cst_17 = arith.constant 0.000000e+00 : f32
    %206 = vector.broadcast %cst_17 : f32 to vector<8x128xf32>
    %207 = arith.maximumf %205, %206 : vector<8x128xf32>
    %208 = math.tanh %207 : vector<8x128xf32>
    %c0_18 = arith.constant 0 : index
    %c0_19 = arith.constant 0 : index
    %c0_20 = arith.constant 0 : index
    %c0_21 = arith.constant 0 : index
    %209 = vector.load %arg3[%c0_18, %c0_19, %c0_20, %c0_21] : memref<1x5x8x128xf32, #tpu.memory_space<vmem>>, vector<1x1x8x128xf32>
    %210 = vector.shape_cast %209 : vector<1x1x8x128xf32> to vector<8x128xf32>
    %211 = vector.shape_cast %208 : vector<8x128xf32> to vector<1x1x8x128xf32>
    tpu.vector_store %arg3[%c0_18, %c0_19, %c0_20, %c0_21], %211 {strides = array<i32>} : memref<1x5x8x128xf32, #tpu.memory_space<vmem>>, vector<1x1x8x128xf32>,
    %c46 = arith.constant 46 : index
    %212 = memref.load %arg1[%c46] : memref<75xf32, #tpu.memory_space<smem>>
    %213 = vector.broadcast %212 : f32 to vector<8x128xf32>
    %214 = arith.mulf %87, %213 : vector<8x128xf32>
    %c51 = arith.constant 51 : index
    %215 = memref.load %arg1[%c51] : memref<75xf32, #tpu.memory_space<smem>>
    %216 = vector.broadcast %215 : f32 to vector<8x128xf32>
    %217 = arith.mulf %111, %216 : vector<8x128xf32>
    %218 = arith.addf %214, %217 : vector<8x128xf32>
    %c56 = arith.constant 56 : index
    %219 = memref.load %arg1[%c56] : memref<75xf32, #tpu.memory_space<smem>>
    %220 = vector.broadcast %219 : f32 to vector<8x128xf32>
    %221 = arith.mulf %135, %220 : vector<8x128xf32>
    %222 = arith.addf %218, %221 : vector<8x128xf32>
    %c61 = arith.constant 61 : index
    %223 = memref.load %arg1[%c61] : memref<75xf32, #tpu.memory_space<smem>>
    %224 = vector.broadcast %223 : f32 to vector<8x128xf32>
    %225 = arith.mulf %159, %224 : vector<8x128xf32>
    %226 = arith.addf %222, %225 : vector<8x128xf32>
    %c66 = arith.constant 66 : index
    %227 = memref.load %arg1[%c66] : memref<75xf32, #tpu.memory_space<smem>>
    %228 = vector.broadcast %227 : f32 to vector<8x128xf32>
    %229 = arith.mulf %183, %228 : vector<8x128xf32>
    %230 = arith.addf %226, %229 : vector<8x128xf32>
    %c71 = arith.constant 71 : index
    %231 = memref.load %arg1[%c71] : memref<75xf32, #tpu.memory_space<smem>>
    %232 = vector.broadcast %231 : f32 to vector<8x128xf32>
    %233 = arith.addf %230, %232 : vector<8x128xf32>
    %cst_22 = arith.constant 0.000000e+00 : f32
    %234 = vector.broadcast %cst_22 : f32 to vector<8x128xf32>
    %235 = arith.maximumf %233, %234 : vector<8x128xf32>
    %236 = math.tanh %235 : vector<8x128xf32>
    %c0_23 = arith.constant 0 : index
    %c1_24 = arith.constant 1 : index
    %c0_25 = arith.constant 0 : index
    %c0_26 = arith.constant 0 : index
    %237 = vector.load %arg3[%c0_23, %c1_24, %c0_25, %c0_26] : memref<1x5x8x128xf32, #tpu.memory_space<vmem>>, vector<1x1x8x128xf32>
    %238 = vector.shape_cast %237 : vector<1x1x8x128xf32> to vector<8x128xf32>
    %239 = vector.shape_cast %236 : vector<8x128xf32> to vector<1x1x8x128xf32>
    tpu.vector_store %arg3[%c0_23, %c1_24, %c0_25, %c0_26], %239 {strides = array<i32>} : memref<1x5x8x128xf32, #tpu.memory_space<vmem>>, vector<1x1x8x128xf32>,
    %c47 = arith.constant 47 : index
    %240 = memref.load %arg1[%c47] : memref<75xf32, #tpu.memory_space<smem>>
    %241 = vector.broadcast %240 : f32 to vector<8x128xf32>
    %242 = arith.mulf %87, %241 : vector<8x128xf32>
    %c52 = arith.constant 52 : index
    %243 = memref.load %arg1[%c52] : memref<75xf32, #tpu.memory_space<smem>>
    %244 = vector.broadcast %243 : f32 to vector<8x128xf32>
    %245 = arith.mulf %111, %244 : vector<8x128xf32>
    %246 = arith.addf %242, %245 : vector<8x128xf32>
    %c57 = arith.constant 57 : index
    %247 = memref.load %arg1[%c57] : memref<75xf32, #tpu.memory_space<smem>>
    %248 = vector.broadcast %247 : f32 to vector<8x128xf32>
    %249 = arith.mulf %135, %248 : vector<8x128xf32>
    %250 = arith.addf %246, %249 : vector<8x128xf32>
    %c62 = arith.constant 62 : index
    %251 = memref.load %arg1[%c62] : memref<75xf32, #tpu.memory_space<smem>>
    %252 = vector.broadcast %251 : f32 to vector<8x128xf32>
    %253 = arith.mulf %159, %252 : vector<8x128xf32>
    %254 = arith.addf %250, %253 : vector<8x128xf32>
    %c67 = arith.constant 67 : index
    %255 = memref.load %arg1[%c67] : memref<75xf32, #tpu.memory_space<smem>>
    %256 = vector.broadcast %255 : f32 to vector<8x128xf32>
    %257 = arith.mulf %183, %256 : vector<8x128xf32>
    %258 = arith.addf %254, %257 : vector<8x128xf32>
    %c72 = arith.constant 72 : index
    %259 = memref.load %arg1[%c72] : memref<75xf32, #tpu.memory_space<smem>>
    %260 = vector.broadcast %259 : f32 to vector<8x128xf32>
    %261 = arith.addf %258, %260 : vector<8x128xf32>
    %cst_27 = arith.constant 0.000000e+00 : f32
    %262 = vector.broadcast %cst_27 : f32 to vector<8x128xf32>
    %263 = arith.maximumf %261, %262 : vector<8x128xf32>
    %264 = math.tanh %263 : vector<8x128xf32>
    %c0_28 = arith.constant 0 : index
    %c2_29 = arith.constant 2 : index
    %c0_30 = arith.constant 0 : index
    %c0_31 = arith.constant 0 : index
    %265 = vector.load %arg3[%c0_28, %c2_29, %c0_30, %c0_31] : memref<1x5x8x128xf32, #tpu.memory_space<vmem>>, vector<1x1x8x128xf32>
    %266 = vector.shape_cast %265 : vector<1x1x8x128xf32> to vector<8x128xf32>
    %267 = vector.shape_cast %264 : vector<8x128xf32> to vector<1x1x8x128xf32>
    tpu.vector_store %arg3[%c0_28, %c2_29, %c0_30, %c0_31], %267 {strides = array<i32>} : memref<1x5x8x128xf32, #tpu.memory_space<vmem>>, vector<1x1x8x128xf32>,
    %c48 = arith.constant 48 : index
    %268 = memref.load %arg1[%c48] : memref<75xf32, #tpu.memory_space<smem>>
    %269 = vector.broadcast %268 : f32 to vector<8x128xf32>
    %270 = arith.mulf %87, %269 : vector<8x128xf32>
    %c53 = arith.constant 53 : index
    %271 = memref.load %arg1[%c53] : memref<75xf32, #tpu.memory_space<smem>>
    %272 = vector.broadcast %271 : f32 to vector<8x128xf32>
    %273 = arith.mulf %111, %272 : vector<8x128xf32>
    %274 = arith.addf %270, %273 : vector<8x128xf32>
    %c58 = arith.constant 58 : index
    %275 = memref.load %arg1[%c58] : memref<75xf32, #tpu.memory_space<smem>>
    %276 = vector.broadcast %275 : f32 to vector<8x128xf32>
    %277 = arith.mulf %135, %276 : vector<8x128xf32>
    %278 = arith.addf %274, %277 : vector<8x128xf32>
    %c63 = arith.constant 63 : index
    %279 = memref.load %arg1[%c63] : memref<75xf32, #tpu.memory_space<smem>>
    %280 = vector.broadcast %279 : f32 to vector<8x128xf32>
    %281 = arith.mulf %159, %280 : vector<8x128xf32>
    %282 = arith.addf %278, %281 : vector<8x128xf32>
    %c68 = arith.constant 68 : index
    %283 = memref.load %arg1[%c68] : memref<75xf32, #tpu.memory_space<smem>>
    %284 = vector.broadcast %283 : f32 to vector<8x128xf32>
    %285 = arith.mulf %183, %284 : vector<8x128xf32>
    %286 = arith.addf %282, %285 : vector<8x128xf32>
    %c73 = arith.constant 73 : index
    %287 = memref.load %arg1[%c73] : memref<75xf32, #tpu.memory_space<smem>>
    %288 = vector.broadcast %287 : f32 to vector<8x128xf32>
    %289 = arith.addf %286, %288 : vector<8x128xf32>
    %cst_32 = arith.constant 0.000000e+00 : f32
    %290 = vector.broadcast %cst_32 : f32 to vector<8x128xf32>
    %291 = arith.maximumf %289, %290 : vector<8x128xf32>
    %292 = math.tanh %291 : vector<8x128xf32>
    %c0_33 = arith.constant 0 : index
    %c3_34 = arith.constant 3 : index
    %c0_35 = arith.constant 0 : index
    %c0_36 = arith.constant 0 : index
    %293 = vector.load %arg3[%c0_33, %c3_34, %c0_35, %c0_36] : memref<1x5x8x128xf32, #tpu.memory_space<vmem>>, vector<1x1x8x128xf32>
    %294 = vector.shape_cast %293 : vector<1x1x8x128xf32> to vector<8x128xf32>
    %295 = vector.shape_cast %292 : vector<8x128xf32> to vector<1x1x8x128xf32>
    tpu.vector_store %arg3[%c0_33, %c3_34, %c0_35, %c0_36], %295 {strides = array<i32>} : memref<1x5x8x128xf32, #tpu.memory_space<vmem>>, vector<1x1x8x128xf32>,
    %c49 = arith.constant 49 : index
    %296 = memref.load %arg1[%c49] : memref<75xf32, #tpu.memory_space<smem>>
    %297 = vector.broadcast %296 : f32 to vector<8x128xf32>
    %298 = arith.mulf %87, %297 : vector<8x128xf32>
    %c54 = arith.constant 54 : index
    %299 = memref.load %arg1[%c54] : memref<75xf32, #tpu.memory_space<smem>>
    %300 = vector.broadcast %299 : f32 to vector<8x128xf32>
    %301 = arith.mulf %111, %300 : vector<8x128xf32>
    %302 = arith.addf %298, %301 : vector<8x128xf32>
    %c59 = arith.constant 59 : index
    %303 = memref.load %arg1[%c59] : memref<75xf32, #tpu.memory_space<smem>>
    %304 = vector.broadcast %303 : f32 to vector<8x128xf32>
    %305 = arith.mulf %135, %304 : vector<8x128xf32>
    %306 = arith.addf %302, %305 : vector<8x128xf32>
    %c64 = arith.constant 64 : index
    %307 = memref.load %arg1[%c64] : memref<75xf32, #tpu.memory_space<smem>>
    %308 = vector.broadcast %307 : f32 to vector<8x128xf32>
    %309 = arith.mulf %159, %308 : vector<8x128xf32>
    %310 = arith.addf %306, %309 : vector<8x128xf32>
    %c69 = arith.constant 69 : index
    %311 = memref.load %arg1[%c69] : memref<75xf32, #tpu.memory_space<smem>>
    %312 = vector.broadcast %311 : f32 to vector<8x128xf32>
    %313 = arith.mulf %183, %312 : vector<8x128xf32>
    %314 = arith.addf %310, %313 : vector<8x128xf32>
    %c74 = arith.constant 74 : index
    %315 = memref.load %arg1[%c74] : memref<75xf32, #tpu.memory_space<smem>>
    %316 = vector.broadcast %315 : f32 to vector<8x128xf32>
    %317 = arith.addf %314, %316 : vector<8x128xf32>
    %cst_37 = arith.constant 0.000000e+00 : f32
    %318 = vector.broadcast %cst_37 : f32 to vector<8x128xf32>
    %319 = arith.maximumf %317, %318 : vector<8x128xf32>
    %320 = math.tanh %319 : vector<8x128xf32>
    %c0_38 = arith.constant 0 : index
    %c4_39 = arith.constant 4 : index
    %c0_40 = arith.constant 0 : index
    %c0_41 = arith.constant 0 : index
    %321 = vector.load %arg3[%c0_38, %c4_39, %c0_40, %c0_41] : memref<1x5x8x128xf32, #tpu.memory_space<vmem>>, vector<1x1x8x128xf32>
    %322 = vector.shape_cast %321 : vector<1x1x8x128xf32> to vector<8x128xf32>
    %323 = vector.shape_cast %320 : vector<8x128xf32> to vector<1x1x8x128xf32>
    tpu.vector_store %arg3[%c0_38, %c4_39, %c0_40, %c0_41], %323 {strides = array<i32>} : memref<1x5x8x128xf32, #tpu.memory_space<vmem>>, vector<1x1x8x128xf32>,
    return
  }
  func.func @transform_0(%arg0: i32, %arg1: memref<75xf32, #tpu.memory_space<smem>>) -> (i32, i32, i32, i32) {
    %c0_i32 = arith.constant 0 : i32
    %c0_i32_0 = arith.constant 0 : i32
    %c0_i32_1 = arith.constant 0 : i32
    %c0_i32_2 = arith.constant 0 : i32
    return %arg0, %c0_i32, %c0_i32_0, %c0_i32_1 : i32, i32, i32, i32
  }
  func.func @transform_1(%arg0: i32, %arg1: memref<75xf32, #tpu.memory_space<smem>>) -> (i32, i32, i32, i32) {
    %c0_i32 = arith.constant 0 : i32
    %c0_i32_0 = arith.constant 0 : i32
    %c0_i32_1 = arith.constant 0 : i32
    %c0_i32_2 = arith.constant 0 : i32
    return %arg0, %c0_i32, %c0_i32_0, %c0_i32_1 : i32, i32, i32, i32
  }
}

</mosaic_0001>

<bundles_post_ra>
// kernel: tpu_custom_call.1
= control target key start
LH: loop header
LB: loop body
LE: loop exit
PB: predicated region body
PF: predicated region fallthrough
CT: control target
= control target key end

     0   :  { %s825_s0 = inlined_call_operand.hbm [shape: f32[75], index: 0, kind: input, shape index: {}]   ;;  %s826_s1 = inlined_call_operand.hbm [shape: f32[1,2,8,128], index: 1, kind: input, shape index: {}]   ;;  %s827_s2 = inlined_call_operand.hbm [shape: f32[1,5,8,128], index: 2, kind: output, shape index: {}]  }
   0x1   :  { %s436_s11 = scalar_lea.hbm %s825_s0, 16 }
   0x2   :  { %p437_p0 = scmp.ne.s32.totalorder %s825_s0, %s436_s11  ;;  %p440_p1 = scmp.lt.u32.totalorder %s436_s11, %s825_s0 }
   0x4   :  { %p442_p2 = pnand %p440_p1, %p437_p0 }
   0x6   :  { %445 = shalt.err (!%p442_p2)  }
   0x7   :  { %s496_s16 = smov [#allocation3]  }
   0x8   :  { %8 = dma.hbm_to_smem %s825_s0, 16, %s496_s16, [#allocation2] }
   0x9   :  { %490 = dma.done.wait [#allocation2], 16 }
   0xa   :  { %491 = vsyncadd [#allocation2], 4294967280 }
   0xb   :  { %10 = sfence }
   0xc   :  { %11 = vsyncpa [#allocation5], 0 }
   0xd   :  { %12 = vsyncpa [#allocation6], 0  ;;  %s497_s19 = smov [#allocation4]   ;;  %s446_s23 = scalar_lea.hbm %s826_s1, 256 }
   0xe   :  { %s18_s20 = sshll.u32 %s497_s19, 4  ;;  %p447_p3 = scmp.ne.s32.totalorder %s826_s1, %s446_s23  ;;  %s19_s20 = int_to_ptr.vmem [resolvable:$true] %s18_s20 }
   0xf   :  { %p450_p4 = scmp.lt.u32.totalorder %s446_s23, %s826_s1 }
  0x11   :  { %p452_p5 = pnand %p450_p4, %p447_p3 }
  0x13   :  { %455 = shalt.err (!%p452_p5)
}
  0x14   :  { %s456_s0 = scalar_lea.vmem %s19_s20, 256  ;;  %p461_p7 = scmp.lt.s32.totalorder %s19_s20, %s19_s20 }
  0x15   :  { %p457_p6 = scmp.ne.s32.totalorder %s19_s20, %s456_s0  ;;  %p462_p8 = scmp.lt.s32.totalorder %s456_s0, %s456_s0 }
  0x17   :  { %p463_p9 = por %p462_p8, %p461_p7 }
  0x19   :  { %p464_p10 = pnand %p463_p9, %p457_p6 }
  0x1b   :  { %467 = shalt.err (!%p464_p10)
}
  0x1c   :  { %s498_s28 = smov 128   ;;  %s499_s29 = smov 8  }
  0x1d   :  { %24 = dma.hbm_to_vmem [thread:$0]  %s826_s1, 256, %s19_s20, [#allocation5], %s498_s28, %s498_s28, %s499_s29  }
  0x1e   :  { %492 = dma.done.wait [#allocation5], 256  }
  0x1f   :  { %493 = vsyncadd [#allocation5], 4294967040  ;;  %s31_s4 = sld [smem:[#allocation3]]  ;;  %s347_s5 = sld [smem:[#allocation3 + $0x5]]  ;;  %v28_v0 = vld [vmem:[#allocation4] sm:$0xff]  ;;  %v30_v1 = vld [vmem:[#allocation4 + $0x8] sm:$0xff] }
  0x20   :  { %s543_s6 = sld [smem:[#allocation3 + $0xa]]  ;;  %s349_s7 = sld [smem:[#allocation3 + $0x1]] }
  0x21   :  { %s350_s8 = sld [smem:[#allocation3 + $0x6]]  ;;  %s545_s9 = sld [smem:[#allocation3 + $0xb]] }
  0x22   :  { %s352_s10 = sld [smem:[#allocation3 + $0x2]]  ;;  %s353_s11 = sld [smem:[#allocation3 + $0x7]] }
  0x23   :  { %s547_s12 = sld [smem:[#allocation3 + $0xc]]  ;;  %s549_s13 = sld [smem:[#allocation3 + $0x3]] }
  0x24   :  { %s551_s14 = sld [smem:[#allocation3 + $0x8]]  ;;  %s553_s1 = sld [smem:[#allocation3 + $0xd]] }
  0x25   :  { %v32_v2 = vstv %s31_s4  ;;  %v35_v3 = vstv %s347_s5  ;;  %s555_s15 = sld [smem:[#allocation3 + $0x4]]  ;;  %s557_s16 = sld [smem:[#allocation3 + $0x9]] }
  0x26   :  { %v33_v4 = vmul.f32 %v32_v2, %v28_v0  ;;  %v36_v5 = vmul.f32 %v35_v3, %v30_v1  ;;  %v43_v6 = vstv %s349_s7  ;;  %s559_s17 = sld [smem:[#allocation3 + $0xe]]  ;;  %s561_s18 = sld [smem:[#allocation3 + $0xf]]  ;;  %v39_v7 = vstv %s543_s6 }
  0x27   :  { %v44_v8 = vmul.f32 %v43_v6, %v28_v0  ;;  %v46_v9 = vstv %s350_s8  ;;  %v50_v10 = vstv %s545_s9  ;;  %s565_s19 = sld [smem:[#allocation3 + $0x14]]  ;;  %s567_s20 = sld [smem:[#allocation3 + $0x19]] }
  0x28   :  { %v37_v11 = vadd.f32 %v36_v5, %v33_v4  ;;  %v47_v12 = vmul.f32 %v46_v9, %v30_v1  ;;  %v54_v13 = vstv %s352_s10  ;;  %v57_v14 = vstv %s353_s11  ;;  %s569_s21 = sld [smem:[#allocation3 + $0x1e]]  ;;  %s571_s22 = sld [smem:[#allocation3 + $0x23]] }
  0x29   :  { %v55_v15 = vmul.f32 %v54_v13, %v28_v0  ;;  %v58_v16 = vmul.f32 %v57_v14, %v30_v1  ;;  %v61_v17 = vstv %s547_s12  ;;  %v65_v18 = vstv %s549_s13  ;;  %s575_s23 = sld [smem:[#allocation3 + $0x28]]  ;;  %s580_s25 = sld [smem:[#allocation3 + $0x15]] }
  0x2a   :  { %s577_s24 = sld [smem:[#allocation3 + $0x10]]  ;;  %v40_v19 = vadd.f32 %v39_v7, %v37_v11  ;;  %v48_v20 = vadd.f32 %v47_v12, %v44_v8  ;;  %v66_v21 = vmul.f32 %v65_v18, %v28_v0  ;;  %v68_v22 = vstv %s551_s14  ;;  %s582_s26 = sld [smem:[#allocation3 + $0x1a]] }
  0x2b   :  { %v59_v23 = vadd.f32 %v58_v16, %v55_v15  ;;  %v69_v24 = vmul.f32 %v68_v22, %v30_v1  ;;  %v72_v25 = vstv %s553_s1  ;;  %v76_v26 = vstv %s555_s15  ;;  %s586_s27 = sld [smem:[#allocation3 + $0x1f]]  ;;  %s591_s0 = sld [smem:[#allocation3 + $0x24]] }
  0x2c   :  { %v588_v27 = vmax.f32 %v40_v19, 0.0  ;;  %v51_v28 = vadd.f32 %v50_v10, %v48_v20  ;;  %v77_v29 = vmul.f32 %v76_v26, %v28_v0  ;;  %v79_v30 = vstv %s557_s16  ;;  %s593_s30 = sld [smem:[#allocation3 + $0x29]]  ;;  %s603_s4 = sld [smem:[#allocation3 + $0x16]] }
  0x2d   :  { %v62_v31 = vadd.f32 %v61_v17, %v59_v23  ;;  %v70_v32 = vadd.f32 %v69_v24, %v66_v21  ;;  %v80_v33 = vmul.f32 %v79_v30, %v30_v1  ;;  %v83_v34 = vstv %s559_s17  ;;  %s596_s3 = sld [smem:[#allocation3 + $0x11]]  ;;  %s605_s5 = sld [smem:[#allocation3 + $0x1b]] }
  0x2e   :  { %v598_v35 = vmax.f32 %v51_v28, 0.0  ;;  %v87_v36 = vstv %s561_s18  ;;  %v90_v37 = vstv %s565_s19  ;;  %v94_v38 = vstv %s567_s20  ;;  %s610_s6 = sld [smem:[#allocation3 + $0x20]]  ;;  %s616_s7 = sld [smem:[#allocation3 + $0x25]] }
  0x2f   :  { %v607_v39 = vmax.f32 %v62_v31, 0.0  ;;  %v73_v40 = vadd.f32 %v72_v25, %v70_v32  ;;  %v81_v41 = vadd.f32 %v80_v33, %v77_v29  ;;  %v88_v42 = vmul.f32 %v87_v36, %v588_v27  ;;  %s618_s8 = sld [smem:[#allocation3 + $0x2a]]  ;;  %s629_s10 = sld [smem:[#allocation3 + $0x17]] }
  0x30   :  { %v91_v43 = vmul.f32 %v90_v37, %v598_v35  ;;  %v98_v44 = vstv %s569_s21  ;;  %v102_v45 = vstv %s571_s22  ;;  %v106_v46 = vstv %s575_s23  ;;  %s624_s9 = sld [smem:[#allocation3 + $0x12]]  ;;  %s631_s11 = sld [smem:[#allocation3 + $0x1c]] }
  0x31   :  { %v620_v47 = vmax.f32 %v73_v40, 0.0  ;;  %v84_v48 = vadd.f32 %v83_v34, %v81_v41  ;;  %v95_v49 = vmul.f32 %v94_v38, %v607_v39  ;;  %v110_v50 = vstv %s577_s24  ;;  %s641_s12 = sld [smem:[#allocation3 + $0x21]]  ;;  %s643_s13 = sld [smem:[#allocation3 + $0x26]] }
  0x32   :  { %v92_v51 = vadd.f32 %v91_v43, %v88_v42  ;;  %v111_v52 = vmul.f32 %v110_v50, %v588_v27  ;;  %v113_v53 = vstv %s580_s25  ;;  %v117_v54 = vstv %s582_s26  ;;  %s648_s14 = sld [smem:[#allocation3 + $0x2b]]  ;;  %s655_s15 = sld [smem:[#allocation3 + $0x18]] }
  0x33   :  { %v633_v55 = vmax.f32 %v84_v48, 0.0  ;;  %v99_v56 = vmul.f32 %v98_v44, %v620_v47  ;;  %v114_v57 = vmul.f32 %v113_v53, %v598_v35  ;;  %v118_v58 = vmul.f32 %v117_v54, %v607_v39  ;;  %s653_s1 = sld [smem:[#allocation3 + $0x13]]  ;;  %s660_s16 = sld [smem:[#allocation3 + $0x1d]] }
  0x34   :  { %v96_v59 = vadd.f32 %v95_v49, %v92_v51  ;;  %v121_v60 = vstv %s586_s27  ;;  %v125_v61 = vstv %s591_s0  ;;  %v129_v62 = vstv %s593_s30  ;;  %s665_s17 = sld [smem:[#allocation3 + $0x22]]  ;;  %s667_s18 = sld [smem:[#allocation3 + $0x27]] }
  0x35   :  { %v103_v63 = vmul.f32 %v102_v45, %v633_v55  ;;  %v115_v0 = vadd.f32 %v114_v57, %v111_v52  ;;  %v122_v1 = vmul.f32 %v121_v60, %v620_v47  ;;  %v126_v2 = vmul.f32 %v125_v61, %v633_v55  ;;  %s674_s19 = sld [smem:[#allocation3 + $0x2c]]  ;;  %s676_s20 = sld [smem:[#allocation3 + $0x2d]] }
  0x36   :  { %v100_v3 = vadd.f32 %v99_v56, %v96_v59  ;;  %v133_v4 = vstv %s596_s3  ;;  %v136_v5 = vstv %s603_s4  ;;  %v140_v6 = vstv %s605_s5  ;;  %s680_s21 = sld [smem:[#allocation3 + $0x32]]  ;;  %s687_s22 = sld [smem:[#allocation3 + $0x37]] }
  0x37   :  { %v119_v7 = vadd.f32 %v118_v58, %v115_v0  ;;  %v134_v8 = vmul.f32 %v133_v4, %v588_v27  ;;  %v137_v9 = vmul.f32 %v136_v5, %v598_v35  ;;  %v141_v10 = vmul.f32 %v140_v6, %v607_v39  ;;  %s689_s23 = sld [smem:[#allocation3 + $0x3c]]  ;;  %s692_s24 = sld [smem:[#allocation3 + $0x41]] }
  0x38   :  { %v104_v11 = vadd.f32 %v103_v63, %v100_v3  ;;  %v144_v12 = vstv %s610_s6  ;;  %v148_v13 = vstv %s616_s7  ;;  %v152_v14 = vstv %s618_s8  ;;  %s694_s25 = sld [smem:[#allocation3 + $0x46]]  ;;  %s702_s27 = sld [smem:[#allocation3 + $0x33]] }
  0x39   :  { %v123_v15 = vadd.f32 %v122_v1, %v119_v7  ;;  %v138_v16 = vadd.f32 %v137_v9, %v134_v8  ;;  %v145_v17 = vmul.f32 %v144_v12, %v620_v47  ;;  %v149_v18 = vmul.f32 %v148_v13, %v633_v55  ;;  %s700_s26 = sld [smem:[#allocation3 + $0x2e]]  ;;  %s707_s0 = sld [smem:[#allocation3 + $0x38]] }
  0x3a   :  { %v107_v19 = vadd.f32 %v106_v46, %v104_v11  ;;  %v156_v20 = vstv %s624_s9  ;;  %v159_v21 = vstv %s629_s10  ;;  %v163_v22 = vstv %s631_s11  ;;  %s713_s30 = sld [smem:[#allocation3 + $0x3d]]  ;;  %s717_s3 = sld [smem:[#allocation3 + $0x42]] }
  0x3b   :  { %v127_v23 = vadd.f32 %v126_v2, %v123_v15  ;;  %v142_v24 = vadd.f32 %v141_v10, %v138_v16  ;;  %v157_v25 = vmul.f32 %v156_v20, %v588_v27  ;;  %v160_v26 = vmul.f32 %v159_v21, %v598_v35  ;;  %s719_s4 = sld [smem:[#allocation3 + $0x47]]  ;;  %s726_s6 = sld [smem:[#allocation3 + $0x34]] }
  0x3c   :  { %v682_v28 = vmax.f32 %v107_v19, 0.0  ;;  %v164_v29 = vmul.f32 %v163_v22, %v607_v39  ;;  %v167_v30 = vstv %s641_s12  ;;  %v171_v31 = vstv %s643_s13  ;;  %s724_s5 = sld [smem:[#allocation3 + $0x2f]]  ;;  %s732_s7 = sld [smem:[#allocation3 + $0x39]] }
  0x3d   :  { %v130_v32 = vadd.f32 %v129_v62, %v127_v23  ;;  %v146_v33 = vadd.f32 %v145_v17, %v142_v24  ;;  %v161_v34 = vadd.f32 %v160_v26, %v157_v25  ;;  %v168_v36 = vmul.f32 %v167_v30, %v620_v47  ;;  %s737_s8 = sld [smem:[#allocation3 + $0x3e]]  ;;  %s739_s9 = sld [smem:[#allocation3 + $0x43]] }
  0x3e   :  { %v172_v37 = vmul.f32 %v171_v31, %v633_v55  ;;  %v175_v38 = vstv %s648_s14  ;;  %v179_v40 = vstv %s653_s1  ;;  %v182_v41 = vstv %s655_s15  ;;  %s746_s10 = sld [smem:[#allocation3 + $0x48]]  ;;  %s755_s12 = sld [smem:[#allocation3 + $0x35]] }
  0x3f   :  { %v704_v42 = vmax.f32 %v130_v32, 0.0  ;;  %v150_v43 = vadd.f32 %v149_v18, %v146_v33  ;;  %v165_v44 = vadd.f32 %v164_v29, %v161_v34  ;;  %v180_v45 = vmul.f32 %v179_v40, %v588_v27  ;;  %s748_s11 = sld [smem:[#allocation3 + $0x30]]  ;;  %s757_s13 = sld [smem:[#allocation3 + $0x3a]] }
  0x40   :  { %v183_v46 = vmul.f32 %v182_v41, %v598_v35  ;;  %v186_v48 = vstv %s660_s16  ;;  %v190_v49 = vstv %s665_s17  ;;  %v194_v50 = vstv %s667_s18  ;;  %s764_s14 = sld [smem:[#allocation3 + $0x3f]]  ;;  %s766_s1 = sld [smem:[#allocation3 + $0x44]] }
  0x41   :  { %v153_v51 = vadd.f32 %v152_v14, %v150_v43  ;;  %v169_v52 = vadd.f32 %v168_v36, %v165_v44  ;;  %v187_v53 = vmul.f32 %v186_v48, %v607_v39  ;;  %v191_v54 = vmul.f32 %v190_v49, %v620_v47  ;;  %s773_s15 = sld [smem:[#allocation3 + $0x31]]  ;;  %s778_s16 = sld [smem:[#allocation3 + $0x36]] }
  0x42   :  { %v184_v27 = vadd.f32 %v183_v46, %v180_v45  ;;  %v195_v35 = vmul.f32 %v194_v50, %v633_v55  ;;  %v198_v56 = vstv %s674_s19  ;;  %v202_v57 = vstv %s676_s20  ;;  %s782_s17 = sld [smem:[#allocation3 + $0x3b]]  ;;  %s784_s18 = sld [smem:[#allocation3 + $0x40]] }
  0x43   :  { %v728_v39 = vmax.f32 %v153_v51, 0.0  ;;  %v173_v47 = vadd.f32 %v172_v37, %v169_v52  ;;  %v203_v58 = vmul.f32 %v202_v57, %v682_v28  ;;  %v205_v59 = vstv %s680_s21  ;;  %s790_s19 = sld [smem:[#allocation3 + $0x49]]  ;;  %s792_s20 = sld [smem:[#allocation3 + $0x45]] }
  0x44   :  { %v188_v60 = vadd.f32 %v187_v53, %v184_v27  ;;  %v206_v55 = vmul.f32 %v205_v59, %v704_v42  ;;  %v209_v61 = vstv %s687_s22  ;;  %v213_v62 = vstv %s689_s23  ;;  %s420_s21 = sld [smem:[#allocation3 + $0x4a]]  ;;  %s500_s22 = smov [#allocation7]  }
  0x45   :  { %v176_v63 = vadd.f32 %v175_v38, %v173_v47  ;;  %v210_v0 = vmul.f32 %v209_v61, %v728_v39  ;;  %v217_v1 = vstv %s692_s24  ;;  %v221_v2 = vstv %s694_s25  ;;  %s335_s23 = sshll.u32 %s500_s22, 4  ;;  %s336_s23 = int_to_ptr.vmem [resolvable:$true] %s335_s23 }
  0x46   :  { %v192_v3 = vadd.f32 %v191_v54, %v188_v60  ;;  %v207_v4 = vadd.f32 %v206_v55, %v203_v58  ;;  %v227_v5 = vstv %s700_s26  ;;  %v230_v6 = vstv %s702_s27  ;;  %s468_s24 = scalar_lea.vmem %s336_s23, 640  ;;  %p473_p12 = scmp.lt.s32.totalorder %s336_s23, %s336_s23 }
  0x47   :  { %v750_v7 = vmax.f32 %v176_v63, 0.0  ;;  %v228_v8 = vmul.f32 %v227_v5, %v682_v28  ;;  %v231_v9 = vmul.f32 %v230_v6, %v704_v42  ;;  %v234_v10 = vstv %s707_s0  ;;  %p469_p11 = scmp.ne.s32.totalorder %s336_s23, %s468_s24  ;;  %p474_p13 = scmp.lt.s32.totalorder %s468_s24, %s468_s24 }
  0x48   :  { %v196_v11 = vadd.f32 %v195_v35, %v192_v3  ;;  %v211_v12 = vadd.f32 %v210_v0, %v207_v4  ;;  %v235_v13 = vmul.f32 %v234_v10, %v728_v39  ;;  %v238_v14 = vstv %s713_s30 }
  0x49   :  { %v214_v15 = vmul.f32 %v213_v62, %v750_v7  ;;  %v232_v16 = vadd.f32 %v231_v9, %v228_v8  ;;  %v239_v17 = vmul.f32 %v238_v14, %v750_v7  ;;  %v242_v18 = vstv %s717_s3  ;;  %p475_p0 = por %p474_p13, %p473_p12 }
  0x4a   :  { %v199_v19 = vadd.f32 %v198_v56, %v196_v11  ;;  %v246_v20 = vstv %s719_s4  ;;  %v253_v21 = vstv %s724_s5  ;;  %v256_v22 = vstv %s726_s6 }
  0x4b   :  { %v215_v23 = vadd.f32 %v214_v15, %v211_v12  ;;  %v236_v24 = vadd.f32 %v235_v13, %v232_v16  ;;  %v254_v25 = vmul.f32 %v253_v21, %v682_v28  ;;  %v257_v26 = vmul.f32 %v256_v22, %v704_v42  ;;  %p476_p1 = pnand %p475_p0, %p469_p11 }
  0x4c   :  { %v200_v29 = vmax.f32 %v199_v19, 0.0  ;;  %v260_v30 = vstv %s732_s7  ;;  %v264_v31 = vstv %s737_s8  ;;  %v268_v32 = vstv %s739_s9 }
  0x4d   :  { %v240_v33 = vadd.f32 %v239_v17, %v236_v24  ;;  %v258_v34 = vadd.f32 %v257_v26, %v254_v25  ;;  %v261_v36 = vmul.f32 %v260_v30, %v728_v39  ;;  %v265_v37 = vmul.f32 %v264_v31, %v750_v7 }
  0x4e   :  { %v218_v38 = vmul.f32 %v217_v1, %v200_v29  ;;  %v243_v40 = vmul.f32 %v242_v18, %v200_v29  ;;  %v269_v41 = vmul.f32 %v268_v32, %v200_v29  ;;  %v272_v43 = vstv %s746_s10 }
  0x4f   :  { %v262_v44 = vadd.f32 %v261_v36, %v258_v34  ;;  %v279_v45 = vstv %s748_s11  ;;  %v282_v46 = vstv %s755_s12  ;;  %v286_v48 = vstv %s757_s13 }
  0x50   :  { %v219_v49 = vadd.f32 %v218_v38, %v215_v23  ;;  %v244_v50 = vadd.f32 %v243_v40, %v240_v33  ;;  %v280_v51 = vmul.f32 %v279_v45, %v682_v28  ;;  %v283_v52 = vmul.f32 %v282_v46, %v704_v42 }
  0x51   :  { %v266_v53 = vadd.f32 %v265_v37, %v262_v44  ;;  %v287_v54 = vmul.f32 %v286_v48, %v728_v39  ;;  %v290_v27 = vstv %s764_s14  ;;  %v294_v35 = vstv %s766_s1 }
  0x52   :  { %v222_v56 = vadd.f32 %v221_v2, %v219_v49  ;;  %v247_v57 = vadd.f32 %v246_v20, %v244_v50  ;;  %v284_v47 = vadd.f32 %v283_v52, %v280_v51  ;;  %v291_v58 = vmul.f32 %v290_v27, %v750_v7 }
  0x53   :  { %v270_v59 = vadd.f32 %v269_v41, %v266_v53  ;;  %v295_v60 = vmul.f32 %v294_v35, %v200_v29  ;;  %v305_v55 = vstv %s773_s15  ;;  %v308_v3 = vstv %s778_s16 }
  0x54   :  { %v223_v61 = vmax.f32 %v222_v56, 0.0  ;;  %v248_v62 = vmax.f32 %v247_v57, 0.0  ;;  %v288_v63 = vadd.f32 %v287_v54, %v284_v47  ;;  %v306_v0 = vmul.f32 %v305_v55, %v682_v28 }
  0x55   :  { %v273_v1 = vadd.f32 %v272_v43, %v270_v59  ;;  %v312_v4 = vstv %s782_s17  ;;  %v316_v5 = vstv %s784_s18  ;;  %v309_v6 = vmul.f32 %v308_v3, %v704_v42 }
  0x56   :  { %426 = vtanh.f32 %v223_v61  ;;  %v292_v2 = vadd.f32 %v291_v58, %v288_v63  ;;  %v313_v8 = vmul.f32 %v312_v4, %v728_v39  ;;  %v298_v10 = vstv %s790_s19 }
  0x57   :  { %428 = vtanh.f32 %v248_v62  ;;  %v274_v9 = vmax.f32 %v273_v1, 0.0  ;;  %v320_v11 = vstv %s792_s20  ;;  %v310_v13 = vadd.f32 %v309_v6, %v306_v0 }
  0x58   :  { %v296_v12 = vadd.f32 %v295_v60, %v292_v2  ;;  %v317_v14 = vmul.f32 %v316_v5, %v750_v7  ;;  %v321_v16 = vmul.f32 %v320_v11, %v200_v29  ;;  %v324_v19 = vstv %s420_s21 }
  0x59   :  { %430 = vtanh.f32 %v274_v9  ;;  %v314_v15 = vadd.f32 %v313_v8, %v310_v13 }
  0x5a   :  { %v299_v28 = vadd.f32 %v298_v10, %v296_v12 }
  0x5b   :  { %v318_v18 = vadd.f32 %v317_v14, %v314_v15 }
  0x5c   :  { %v300_v17 = vmax.f32 %v299_v28, 0.0 }
  0x5d   :  { %v322_v20 = vadd.f32 %v321_v16, %v318_v18 }
  0x5e   :  { %432 = vtanh.f32 %v300_v17 }
  0x5f   :  { %v325_v21 = vadd.f32 %v324_v19, %v322_v20 }
  0x60   :  { %v427_v42 = vpop.eup %426 }
  0x61   :  { %v429_v39 = vpop.eup %428  ;;  %225 = vst [vmem:[#allocation7] sm:$0xff] %v427_v42  ;;  %v326_v22 = vmax.f32 %v325_v21, 0.0 }
  0x62   :  { %251 = vst [vmem:[#allocation7 + $0x8] sm:$0xff] %v429_v39 }
  0x63   :  { %v431_v23 = vpop.eup %430  ;;  %434 = vtanh.f32 %v326_v22 }
  0x64   :  { %277 = vst [vmem:[#allocation7 + $0x10] sm:$0xff] %v431_v23 }
  0x68   :  { %v433_v24 = vpop.eup %432 }
  0x69   :  { %303 = vst [vmem:[#allocation7 + $0x18] sm:$0xff] %v433_v24 }
  0x6d   :  { %v435_v7 = vpop.eup %434 }
  0x6e   :  { %329 = vst [vmem:[#allocation7 + $0x20] sm:$0xff] %v435_v7 }
  0x6f   :  { %479 = shalt.err (!%p476_p1)
}
  0x70   :  { %s480_s27 = scalar_lea.hbm %s827_s2, 640 }
  0x71   :  { %p481_p2 = scmp.ne.s32.totalorder %s827_s2, %s480_s27  ;;  %p484_p3 = scmp.lt.u32.totalorder %s480_s27, %s827_s2 }
  0x73   :  { %p486_p4 = pnand %p484_p3, %p481_p2 }
  0x75   :  { %489 = shalt.err (!%p486_p4)
}
  0x76   :  { %341 = dma.vmem_to_hbm [thread:$0]  %s336_s23, 640, %s827_s2, [#allocation6], %s498_s28, %s498_s28, %s499_s29  }
  0x77   :  { %494 = dma.done.wait [#allocation6], 640  }
  0x78   :  { %495 = vsyncadd [#allocation6], 4294966656 }
  0x79   :  { %345 = vsyncpa [#allocation5], 1 }
  0x7a   :  { %346 = vsyncpa [#allocation6], 1 }

</bundles_post_ra>
